<compile_context>
chip_gen: v6e
topology: v6e:2x2x1
jax: 0.10.0
libtpu: 0.0.40
codegen_flags: <defaults>
</compile_context>

<pallas_src>
import math

import jax
import jax.numpy as jnp
from jax import lax
from jax.experimental import pallas as pl
from jax.experimental.pallas import tpu as pltpu


def _round_up(n, m):
    return ((n + m - 1) // m) * m


# 48 MiB: above the v5e/v6e scoped-VMEM defaults (16/32 MiB), leaves headroom
# below v7x's 64 MiB physical VMEM per TensorCore.
_VMEM_LIMIT_BYTES = 48 * 1024 * 1024


def _erf(x):
    # TODO(synk): lax.erf has no guaranteed Mosaic TPU lowering; use the
    # Abramowitz & Stegun 7.1.26 polynomial (|error| <= 1.5e-7) built from
    # exp/mul/add only (EUP + VPU slots).
    a1, a2, a3, a4, a5 = (0.254829592, -0.284496736, 1.421413741,
                          -1.453152027, 1.061405429)
    p = 0.3275911
    sign = jnp.where(x < 0.0, -1.0, 1.0)
    ax = jnp.abs(x)
    t = 1.0 / (1.0 + p * ax)
    poly = ((((a5 * t + a4) * t + a3) * t + a2) * t + a1) * t
    return sign * (1.0 - poly * jnp.exp(-ax * ax))


def _gelu(x):
    # x * 0.5 * (1 + erf(x / sqrt(2)))  -- erf-based, as in the PyTorch module.
    return x * 0.5 * (1.0 + _erf(x * (1.0 / math.sqrt(2.0))))


# ---------------------------------------------------------------------------
# Transform kernel: dense(H->H) + GELU + LayerNorm, per token tile
# ---------------------------------------------------------------------------
def _transform_kernel(x_ref, wd_ref, bd_ref, g_ref, beta_ref, o_ref):
    # x_ref: [TT, H] (compute dtype)  wd_ref: [H, H] (compute dtype)
    # bd/g/beta: [1, H] f32           o_ref: [TT, H] (compute dtype)
    h = lax.dot_general(x_ref[...], wd_ref[...],
                        (((1,), (1,)), ((), ())),
                        preferred_element_type=jnp.float32)
    h = _gelu(h + bd_ref[...])
    mean = jnp.mean(h, axis=-1, keepdims=True)
    c = h - mean
    var = jnp.mean(c * c, axis=-1, keepdims=True)
    ln = c * lax.rsqrt(var + 1e-12) * g_ref[...] + beta_ref[...]
    o_ref[...] = ln.astype(o_ref.dtype)


# ---------------------------------------------------------------------------
# Decoder kernel: tied-embedding matmul (H->V) + bias, per (token, vocab) tile
# ---------------------------------------------------------------------------
def _decoder_kernel(h_ref, e_ref, db_ref, o_ref):
    # h_ref: [TT, H]  e_ref: [TV, H]  db_ref: [1, TV] f32  o_ref: [TT, TV]
    logits = lax.dot_general(h_ref[...], e_ref[...],
                             (((1,), (1,)), ((), ())),
                             preferred_element_type=jnp.float32)
    o_ref[...] = (logits + db_ref[...]).astype(o_ref.dtype)


def bert_lm_prediction_head(sequence_output, dense_w, dense_b, ln_gamma,
                            ln_beta, embedding_w, decoder_bias, *,
                            tile_tokens=512, tile_vocab=1024,
                            compute_dtype=None):
    lead = sequence_output.shape[:-1]
    H = sequence_output.shape[-1]
    V = embedding_w.shape[0]
    out_dtype = sequence_output.dtype
    if compute_dtype is None:
        compute_dtype = sequence_output.dtype

    x = sequence_output.reshape(-1, H).astype(compute_dtype)
    T = x.shape[0]

    # Tile sizes: sublane-aligned token tile, lane-aligned vocab tile.
    # Ragged last tiles are handled by Pallas (masked edge stores) -- no
    # per-call padding of the big tensors and no post-kernel slice.
    TT = min(tile_tokens, _round_up(T, 8))
    TV = min(tile_vocab, _round_up(V, 128))
    n_tt = pl.cdiv(T, TT)
    n_tv = pl.cdiv(V, TV)

    wd = dense_w.astype(compute_dtype)
    e_w = embedding_w.astype(compute_dtype)   # natural [V, H]; no pad/transpose
    bd = dense_b.reshape(1, H).astype(jnp.float32)
    g = ln_gamma.reshape(1, H).astype(jnp.float32)
    beta = ln_beta.reshape(1, H).astype(jnp.float32)
    db = decoder_bias.reshape(1, V).astype(jnp.float32)

    cbytes = jnp.dtype(compute_dtype).itemsize
    obytes = jnp.dtype(out_dtype).itemsize

    # --- Stage 1: dense + GELU + LayerNorm -> [T, H] in compute dtype ---
    h = pl.pallas_call(
        _transform_kernel,
        out_shape=jax.ShapeDtypeStruct((T, H), compute_dtype),
        grid_spec=pltpu.PrefetchScalarGridSpec(
            num_scalar_prefetch=0,
            grid=(n_tt,),
            in_specs=[
                pl.BlockSpec((TT, H), lambda i: (i, 0)),   # token tile
                pl.BlockSpec((H, H), lambda i: (0, 0)),    # dense weight
                pl.BlockSpec((1, H), lambda i: (0, 0)),    # dense bias (f32)
                pl.BlockSpec((1, H), lambda i: (0, 0)),    # LN gamma (f32)
                pl.BlockSpec((1, H), lambda i: (0, 0)),    # LN beta  (f32)
            ],
            out_specs=pl.BlockSpec((TT, H), lambda i: (i, 0)),
        ),
        compiler_params=pltpu.CompilerParams(
            dimension_semantics=("parallel",),
            vmem_limit_bytes=_VMEM_LIMIT_BYTES),
        cost_estimate=pl.CostEstimate(
            flops=2 * T * H * H,
            transcendentals=T * H,
            bytes_accessed=(2 * T * H + H * H) * cbytes),
    )(x, wd, bd, g, beta)

    # --- Stage 2: decoder matmul against the tied embedding + bias ---
    # If profiling shows exposed DMA on the embedding stream, add
    # pipeline_mode=pl.Buffered(3) to in_specs[1] (watch VMEM on v7x).
    out = pl.pallas_call(
        _decoder_kernel,
        out_shape=jax.ShapeDtypeStruct((T, V), out_dtype),
        grid_spec=pltpu.PrefetchScalarGridSpec(
            num_scalar_prefetch=0,
            grid=(n_tt, n_tv),
            in_specs=[
                pl.BlockSpec((TT, H), lambda i, j: (i, 0)),   # transformed tokens
                pl.BlockSpec((TV, H), lambda i, j: (j, 0)),   # embedding rows
                pl.BlockSpec((1, TV), lambda i, j: (0, j)),   # decoder bias (f32)
            ],
            out_specs=pl.BlockSpec((TT, TV), lambda i, j: (i, j)),
        ),
        compiler_params=pltpu.CompilerParams(
            dimension_semantics=("parallel", "parallel"),
            vmem_limit_bytes=_VMEM_LIMIT_BYTES),
        cost_estimate=pl.CostEstimate(
            flops=2 * T * H * V,
            transcendentals=0,
            bytes_accessed=(T * H + n_tt * V * H) * cbytes + T * V * obytes),
    )(h, e_w, db)

    return out.reshape(*lead, V)


# ---------------------------------------------------------------------------
# NSP head: nn.Linear(H, 2) on pooled_output
# ---------------------------------------------------------------------------
def _nsp_kernel(x_ref, w_ref, b_ref, o_ref):
    # x_ref: [TB, H]  w_ref: [Lp, H]  b_ref: [1, Lp] f32  o_ref: [TB, Lp]
    acc = lax.dot_general(x_ref[...], w_ref[...],
                          (((1,), (1,)), ((), ())),
                          preferred_element_type=jnp.float32)
    o_ref[...] = (acc + b_ref[...]).astype(o_ref.dtype)


def bert_nsp_head(pooled_output, weight, bias, *, tile_batch=512,
                  compute_dtype=None):
    B, H = pooled_output.shape
    L = weight.shape[0]                       # num labels (2)
    if compute_dtype is None:
        compute_dtype = pooled_output.dtype
    Lp = _round_up(L, 128)                    # lane-dense output dim (tiny pad)
    w_pad = jnp.zeros((Lp, H), compute_dtype).at[:L, :].set(
        weight.astype(compute_dtype))
    b_pad = jnp.zeros((1, Lp), jnp.float32).at[0, :L].set(
        bias.astype(jnp.float32))

    TB = min(tile_batch, _round_up(B, 8))
    Bp = _round_up(B, TB)
    x = pooled_output.astype(compute_dtype)
    if Bp != B:                               # tiny (B x H) pad, not the hot path
        x = jnp.pad(x, ((0, Bp - B), (0, 0)))

    out = pl.pallas_call(
        _nsp_kernel,
        out_shape=jax.ShapeDtypeStruct((Bp, Lp), pooled_output.dtype),
        grid_spec=pltpu.PrefetchScalarGridSpec(
            num_scalar_prefetch=0,
            grid=(Bp // TB,),
            in_specs=[
                pl.BlockSpec((TB, H), lambda i: (i, 0)),
                pl.BlockSpec((Lp, H), lambda i: (0, 0)),
                pl.BlockSpec((1, Lp), lambda i: (0, 0)),
            ],
            out_specs=pl.BlockSpec((TB, Lp), lambda i: (i, 0)),
        ),
        compiler_params=pltpu.CompilerParams(
            dimension_semantics=("parallel",)),
    )(x, w_pad, b_pad)
    return out[:B, :L]


def bert_pretraining_heads(sequence_output, pooled_output, params,
                           *, compute_dtype=None):
    prediction_scores = bert_lm_prediction_head(
        sequence_output, params["dense_w"], params["dense_b"],
        params["ln_gamma"], params["ln_beta"],
        params["embedding_w"], params["decoder_bias"],
        compute_dtype=compute_dtype)
    seq_relationship_score = bert_nsp_head(
        pooled_output, params["nsp_w"], params["nsp_b"],
        compute_dtype=compute_dtype)
    return prediction_scores, seq_relationship_score


if __name__ == "__main__":
    key = jax.random.PRNGKey(0)
    keys = jax.random.split(key, 10)
    batch, seq, hidden, vocab = 2, 8, 32, 128
    dtype = jnp.float32

    sequence_output = jax.random.normal(keys[0], (batch, seq, hidden), dtype)
    pooled_output = jax.random.normal(keys[1], (batch, hidden), dtype)

    params = {
        "dense_w": jax.random.normal(keys[2], (hidden, hidden), dtype) * 0.02,
        "dense_b": jax.random.normal(keys[3], (hidden,), dtype) * 0.02,
        "ln_gamma": 1.0 + 0.1 * jax.random.normal(keys[4], (hidden,), dtype),
        "ln_beta": 0.1 * jax.random.normal(keys[5], (hidden,), dtype),
        "embedding_w": jax.random.normal(keys[6], (vocab, hidden), dtype) * 0.02,
        "decoder_bias": jax.random.normal(keys[7], (vocab,), dtype) * 0.02,
        "nsp_w": jax.random.normal(keys[8], (2, hidden), dtype) * 0.02,
        "nsp_b": jax.random.normal(keys[9], (2,), dtype) * 0.02,
    }

    # Default (f32) path -- matches the PyTorch module numerics.
    pred_scores, seq_rel = bert_pretraining_heads(
        sequence_output, pooled_output, params)
    pred_scores = jax.block_until_ready(pred_scores)
    seq_rel = jax.block_until_ready(seq_rel)

    # Pure-JAX reference (exact erf-based GELU).
    x2 = sequence_output.reshape(-1, hidden)
    h = x2 @ params["dense_w"].T + params["dense_b"]
    h = h * 0.5 * (1.0 + jax.scipy.special.erf(h / math.sqrt(2.0)))
    mu = h.mean(-1, keepdims=True)
    var = ((h - mu) ** 2).mean(-1, keepdims=True)
    h = (h - mu) / jnp.sqrt(var + 1e-12) * params["ln_gamma"] + params["ln_beta"]
    ref_pred = (h @ params["embedding_w"].T
                + params["decoder_bias"]).reshape(batch, seq, vocab)
    ref_nsp = pooled_output @ params["nsp_w"].T + params["nsp_b"]

    assert pred_scores.shape == (batch, seq, vocab)
    assert seq_rel.shape == (batch, 2)
    assert jnp.allclose(pred_scores, ref_pred, atol=1e-4, rtol=1e-4), (
        float(jnp.max(jnp.abs(pred_scores - ref_pred))))
    assert jnp.allclose(seq_rel, ref_nsp, atol=1e-5, rtol=1e-5), (
        float(jnp.max(jnp.abs(seq_rel - ref_nsp))))

    # bf16 MXU-feed path (the recommended perf config): bf16 operands,
    # f32 accumulation -- checked against the f32 reference with a loose
    # mixed-precision tolerance.
    pred_bf16 = bert_lm_prediction_head(
        sequence_output, params["dense_w"], params["dense_b"],
        params["ln_gamma"], params["ln_beta"],
        params["embedding_w"], params["decoder_bias"],
        compute_dtype=jnp.bfloat16)
    pred_bf16 = jax.block_until_ready(pred_bf16)
    assert pred_bf16.shape == (batch, seq, vocab)
    assert jnp.allclose(pred_bf16.astype(jnp.float32), ref_pred,
                        atol=5e-2, rtol=0.0), (
        float(jnp.max(jnp.abs(pred_bf16.astype(jnp.float32) - ref_pred))))

    print("KERNEL_OK")
</pallas_src>

<mosaic_0001>
module attributes {stable_mosaic.version = 11 : i64} {
  func.func @_transform_kernel(%arg0: i32, %arg1: memref<16x32xf32, #tpu.memory_space<vmem>>, %arg2: memref<32x32xf32, #tpu.memory_space<vmem>>, %arg3: memref<1x32xf32, #tpu.memory_space<vmem>>, %arg4: memref<1x32xf32, #tpu.memory_space<vmem>>, %arg5: memref<1x32xf32, #tpu.memory_space<vmem>>, %arg6: memref<16x32xf32, #tpu.memory_space<vmem>>) attributes {dimension_semantics = [#tpu.dimension_semantics<parallel>], iteration_bounds = array<i64: 1>, scalar_prefetch = 0 : i64, scratch_operands = 0 : i64, tpu.core_type = #tpu.core_type<tc>, window_params = [{transform_indices = @transform_0, window_bounds = array<i64: 16, 32>}, {pipeline_mode = #tpu.pipeline_mode<synchronous>, transform_indices = @transform_1, window_bounds = array<i64: 32, 32>}, {pipeline_mode = #tpu.pipeline_mode<synchronous>, transform_indices = @transform_2, window_bounds = array<i64: 1, 32>}, {pipeline_mode = #tpu.pipeline_mode<synchronous>, transform_indices = @transform_3, window_bounds = array<i64: 1, 32>}, {pipeline_mode = #tpu.pipeline_mode<synchronous>, transform_indices = @transform_4, window_bounds = array<i64: 1, 32>}, {transform_indices = @transform_5, window_bounds = array<i64: 16, 32>}]} {
    %c0 = arith.constant 0 : index
    %c0_0 = arith.constant 0 : index
    %0 = vector.load %arg1[%c0, %c0_0] : memref<16x32xf32, #tpu.memory_space<vmem>>, vector<16x32xf32>
    %c0_1 = arith.constant 0 : index
    %c0_2 = arith.constant 0 : index
    %1 = vector.load %arg2[%c0_1, %c0_2] : memref<32x32xf32, #tpu.memory_space<vmem>>, vector<32x32xf32>
    %cst = arith.constant dense<0.000000e+00> : vector<16x32xf32>
    %2 = tpu.matmul %0, %1, %cst {dimension_numbers = #tpu.dot_dimension_numbers<[1], [1], [0], [0], [0, 0, 1, 0], [], []>} : vector<16x32xf32>, vector<32x32xf32>, vector<16x32xf32> -> vector<16x32xf32>
    %c0_3 = arith.constant 0 : index
    %c0_4 = arith.constant 0 : index
    %3 = vector.load %arg3[%c0_3, %c0_4] : memref<1x32xf32, #tpu.memory_space<vmem>>, vector<1x32xf32>
    %4 = vector.broadcast %3 : vector<1x32xf32> to vector<16x32xf32>
    %5 = arith.addf %2, %4 : vector<16x32xf32>
    %cst_5 = arith.constant 5.000000e-01 : f32
    %6 = vector.broadcast %cst_5 : f32 to vector<16x32xf32>
    %7 = arith.mulf %5, %6 : vector<16x32xf32>
    %cst_6 = arith.constant 0.707106769 : f32
    %8 = vector.broadcast %cst_6 : f32 to vector<16x32xf32>
    %9 = arith.mulf %5, %8 : vector<16x32xf32>
    %cst_7 = arith.constant 0.000000e+00 : f32
    %10 = vector.broadcast %cst_7 : f32 to vector<16x32xf32>
    %11 = arith.cmpf olt, %9, %10 : vector<16x32xf32>
    %cst_8 = arith.constant -1.000000e+00 : f32
    %cst_9 = arith.constant 1.000000e+00 : f32
    %12 = vector.broadcast %cst_8 : f32 to vector<16x32xf32>
    %13 = vector.broadcast %cst_9 : f32 to vector<16x32xf32>
    %14 = arith.select %11, %12, %13 : vector<16x32xi1>, vector<16x32xf32>
    %15 = math.absf %9 : vector<16x32xf32>
    %cst_10 = arith.constant 0.327591091 : f32
    %16 = vector.broadcast %cst_10 : f32 to vector<16x32xf32>
    %17 = arith.mulf %16, %15 : vector<16x32xf32>
    %cst_11 = arith.constant 1.000000e+00 : f32
    %18 = vector.broadcast %cst_11 : f32 to vector<16x32xf32>
    %19 = arith.addf %18, %17 : vector<16x32xf32>
    %cst_12 = arith.constant 1.000000e+00 : f32
    %20 = vector.broadcast %cst_12 : f32 to vector<16x32xf32>
    %21 = arith.divf %20, %19 : vector<16x32xf32>
    %cst_13 = arith.constant 1.06140542 : f32
    %22 = vector.broadcast %cst_13 : f32 to vector<16x32xf32>
    %23 = arith.mulf %22, %21 : vector<16x32xf32>
    %cst_14 = arith.constant -1.45315206 : f32
    %24 = vector.broadcast %cst_14 : f32 to vector<16x32xf32>
    %25 = arith.addf %23, %24 : vector<16x32xf32>
    %26 = arith.mulf %25, %21 : vector<16x32xf32>
    %cst_15 = arith.constant 1.42141378 : f32
    %27 = vector.broadcast %cst_15 : f32 to vector<16x32xf32>
    %28 = arith.addf %26, %27 : vector<16x32xf32>
    %29 = arith.mulf %28, %21 : vector<16x32xf32>
    %cst_16 = arith.constant -0.284496725 : f32
    %30 = vector.broadcast %cst_16 : f32 to vector<16x32xf32>
    %31 = arith.addf %29, %30 : vector<16x32xf32>
    %32 = arith.mulf %31, %21 : vector<16x32xf32>
    %cst_17 = arith.constant 0.254829586 : f32
    %33 = vector.broadcast %cst_17 : f32 to vector<16x32xf32>
    %34 = arith.addf %32, %33 : vector<16x32xf32>
    %35 = arith.mulf %34, %21 : vector<16x32xf32>
    %cst_18 = arith.constant 0.000000e+00 : f32
    %36 = vector.broadcast %cst_18 : f32 to vector<16x32xf32>
    %37 = arith.subf %36, %15 : vector<16x32xf32>
    %38 = arith.mulf %37, %15 : vector<16x32xf32>
    %39 = math.exp %38 : vector<16x32xf32>
    %40 = arith.mulf %35, %39 : vector<16x32xf32>
    %cst_19 = arith.constant 1.000000e+00 : f32
    %41 = vector.broadcast %cst_19 : f32 to vector<16x32xf32>
    %42 = arith.subf %41, %40 : vector<16x32xf32>
    %43 = arith.mulf %14, %42 : vector<16x32xf32>
    %cst_20 = arith.constant 1.000000e+00 : f32
    %44 = vector.broadcast %cst_20 : f32 to vector<16x32xf32>
    %45 = arith.addf %44, %43 : vector<16x32xf32>
    %46 = arith.mulf %7, %45 : vector<16x32xf32>
    %cst_21 = arith.constant dense<0.000000e+00> : vector<16xf32>
    %47 = vector.multi_reduction <add>, %46, %cst_21 [1] : vector<16x32xf32> to vector<16xf32>
    %48 = vector.shape_cast %47 : vector<16xf32> to vector<16x1xf32>
    %cst_22 = arith.constant 3.200000e+01 : f32
    %49 = vector.broadcast %cst_22 : f32 to vector<16x1xf32>
    %50 = arith.divf %48, %49 : vector<16x1xf32>
    %51 = vector.broadcast %50 : vector<16x1xf32> to vector<16x32xf32>
    %52 = arith.subf %46, %51 : vector<16x32xf32>
    %53 = arith.mulf %52, %52 : vector<16x32xf32>
    %cst_23 = arith.constant dense<0.000000e+00> : vector<16xf32>
    %54 = vector.multi_reduction <add>, %53, %cst_23 [1] : vector<16x32xf32> to vector<16xf32>
    %55 = vector.shape_cast %54 : vector<16xf32> to vector<16x1xf32>
    %cst_24 = arith.constant 3.200000e+01 : f32
    %56 = vector.broadcast %cst_24 : f32 to vector<16x1xf32>
    %57 = arith.divf %55, %56 : vector<16x1xf32>
    %cst_25 = arith.constant 9.99999996E-13 : f32
    %58 = vector.broadcast %cst_25 : f32 to vector<16x1xf32>
    %59 = arith.addf %57, %58 : vector<16x1xf32>
    %60 = math.rsqrt %59 : vector<16x1xf32>
    %61 = vector.broadcast %60 : vector<16x1xf32> to vector<16x32xf32>
    %62 = arith.mulf %52, %61 : vector<16x32xf32>
    %c0_26 = arith.constant 0 : index
    %c0_27 = arith.constant 0 : index
    %63 = vector.load %arg4[%c0_26, %c0_27] : memref<1x32xf32, #tpu.memory_space<vmem>>, vector<1x32xf32>
    %64 = vector.broadcast %63 : vector<1x32xf32> to vector<16x32xf32>
    %65 = arith.mulf %62, %64 : vector<16x32xf32>
    %c0_28 = arith.constant 0 : index
    %c0_29 = arith.constant 0 : index
    %66 = vector.load %arg5[%c0_28, %c0_29] : memref<1x32xf32, #tpu.memory_space<vmem>>, vector<1x32xf32>
    %67 = vector.broadcast %66 : vector<1x32xf32> to vector<16x32xf32>
    %68 = arith.addf %65, %67 : vector<16x32xf32>
    %c0_30 = arith.constant 0 : index
    %c0_31 = arith.constant 0 : index
    %69 = vector.load %arg6[%c0_30, %c0_31] : memref<16x32xf32, #tpu.memory_space<vmem>>, vector<16x32xf32>
    tpu.vector_store %arg6[%c0_30, %c0_31], %68 {strides = array<i32>} : memref<16x32xf32, #tpu.memory_space<vmem>>, vector<16x32xf32>,
    return
  }
  func.func @transform_0(%arg0: i32) -> (i32, i32) {
    %c0_i32 = arith.constant 0 : i32
    %c0_i32_0 = arith.constant 0 : i32
    return %arg0, %c0_i32 : i32, i32
  }
  func.func @transform_1(%arg0: i32) -> (i32, i32) {
    %c0_i32 = arith.constant 0 : i32
    %c0_i32_0 = arith.constant 0 : i32
    %c0_i32_1 = arith.constant 0 : i32
    return %c0_i32, %c0_i32_0 : i32, i32
  }
  func.func @transform_2(%arg0: i32) -> (i32, i32) {
    %c0_i32 = arith.constant 0 : i32
    %c0_i32_0 = arith.constant 0 : i32
    %c0_i32_1 = arith.constant 0 : i32
    return %c0_i32, %c0_i32_0 : i32, i32
  }
  func.func @transform_3(%arg0: i32) -> (i32, i32) {
    %c0_i32 = arith.constant 0 : i32
    %c0_i32_0 = arith.constant 0 : i32
    %c0_i32_1 = arith.constant 0 : i32
    return %c0_i32, %c0_i32_0 : i32, i32
  }
  func.func @transform_4(%arg0: i32) -> (i32, i32) {
    %c0_i32 = arith.constant 0 : i32
    %c0_i32_0 = arith.constant 0 : i32
    %c0_i32_1 = arith.constant 0 : i32
    return %c0_i32, %c0_i32_0 : i32, i32
  }
  func.func @transform_5(%arg0: i32) -> (i32, i32) {
    %c0_i32 = arith.constant 0 : i32
    %c0_i32_0 = arith.constant 0 : i32
    return %arg0, %c0_i32 : i32, i32
  }
}

</mosaic_0001>

<bundles_post_ra>
// kernel: tpu_custom_call.1
= control target key start
LH: loop header
LB: loop body
LE: loop exit
PB: predicated region body
PF: predicated region fallthrough
CT: control target
= control target key end

     0   :  { %10 = vsyncpa [#allocation3], 0  ;;  %s464_s0 = inlined_call_operand.hbm [shape: f32[16,32], index: 0, kind: input, shape index: {}]   ;;  %s465_s1 = inlined_call_operand.hbm [shape: f32[32,32], index: 1, kind: input, shape index: {}]   ;;  %s466_s2 = inlined_call_operand.vmem [shape: f32[1,32], index: 2, kind: input, shape index: {}]   ;;  %s467_s3 = inlined_call_operand.vmem [shape: f32[1,32], index: 3, kind: input, shape index: {}]   ;;  %s468_s4 = inlined_call_operand.vmem [shape: f32[1,32], index: 4, kind: input, shape index: {}]   ;;  %s469_s5 = inlined_call_operand.hbm [shape: f32[16,32], index: 5, kind: output, shape index: {}]  }
   0x1   :  { %11 = vsyncpa [#allocation6], 0 }
   0x2   :  { %12 = vsyncpa [#allocation4], 0  ;;  %s385_s18 = smov [#allocation2]  }
   0x3   :  { %s18_s19 = sshll.u32 %s385_s18, 4  ;;  %s19_s19 = int_to_ptr.vmem [resolvable:$true] %s18_s19 }
   0x4   :  { %s327_s20 = scalar_lea.vmem %s19_s19, 256  ;;  %p332_p1 = scmp.lt.s32.totalorder %s19_s19, %s19_s19 }
   0x5   :  { %p328_p0 = scmp.ne.s32.totalorder %s19_s19, %s327_s20  ;;  %p333_p2 = scmp.lt.s32.totalorder %s327_s20, %s327_s20 }
   0x7   :  { %p334_p3 = por %p333_p2, %p332_p1 }
   0x9   :  { %p335_p4 = pnand %p334_p3, %p328_p0 }
   0xb   :  { %338 = shalt.err (!%p335_p4)
}
   0xc   :  { %s386_s21 = smov 128   ;;  %s387_s22 = smov 8  }
   0xd   :  { %24 = dma.hbm_to_vmem [thread:$0]  %s464_s0, 256, %s19_s19, [#allocation3], %s386_s21, %s386_s21, %s387_s22  }
   0xe   :  { %s388_s25 = smov [#allocation5]  }
   0xf   :  { %s30_s26 = sshll.u32 %s388_s25, 4  ;;  %s31_s26 = int_to_ptr.vmem [resolvable:$true] %s30_s26 }
  0x10   :  { %s347_s27 = scalar_lea.vmem %s31_s26, 512  ;;  %p352_p6 = scmp.lt.s32.totalorder %s31_s26, %s31_s26 }
  0x11   :  { %p348_p5 = scmp.ne.s32.totalorder %s31_s26, %s347_s27  ;;  %p353_p7 = scmp.lt.s32.totalorder %s347_s27, %s347_s27 }
  0x13   :  { %p354_p8 = por %p353_p7, %p352_p6 }
  0x15   :  { %p355_p9 = pnand %p354_p8, %p348_p5 }
  0x17   :  { %358 = shalt.err (!%p355_p9)
}
  0x18   :  { %36 = dma.hbm_to_vmem [thread:$0]  %s465_s1, 512, %s31_s26, [#allocation6], %s386_s21, %s386_s21, %s387_s22  }
  0x19   :  { %379 = dma.done.wait [#allocation3], 256  }
  0x1a   :  { %380 = vsyncadd [#allocation3], 4294967040 }
  0x1b   :  { %381 = dma.done.wait [#allocation6], 512  }
  0x1c   :  { %382 = vsyncadd [#allocation6], 4294966784  ;;  %vm62_vm0 = vcmask 261120   ;;  %v54_v0 = vld [vmem:[#allocation5 + $0x18] sm:$0xff]  ;;  %v53_v1 = vld [vmem:[#allocation5 + $0x10] sm:$0xff]  ;;  %v389_v50 = vmov 1.0  }
  0x1d   :  { %290 = vmatprep.subr.msk.mxu0 %vm62_vm0, %v54_v0  ;;  %v49_v2 = vld [vmem:[#allocation2] sm:$0xff]  ;;  %v52_v3 = vld [vmem:[#allocation5 + $0x8] sm:$0xff]  ;;  %v51_v4 = vld [vmem:[#allocation5] sm:$0xff]  ;;  %s390_s8 = smov [#allocation7]  }
  0x1e   :  { %291 = vmatpush3.xpose.msk.msra.mxu0 %vm62_vm0, %v54_v0  ;;  %298 = vmatprep.mubr.msk.f32.mxu0 %vm62_vm0, %v49_v2  ;;  %v50_v5 = vld [vmem:[#allocation2 + $0x8] sm:$0xff]  ;;  %v275_v6 = vld [vmem:[%s466_s2] ss:$0 sm:$0xff]  ;;  %s262_s9 = sshll.u32 %s390_s8, 4  ;;  %s263_s9 = int_to_ptr.vmem [resolvable:$true] %s262_s9 }
  0x1f   :  { %292 = vmatprep.subr.msk.mxu0 %vm62_vm0, %v53_v1  ;;  %s359_s10 = scalar_lea.vmem %s263_s9, 256  ;;  %p364_p11 = scmp.lt.s32.totalorder %s263_s9, %s263_s9 }
  0x20   :  { %p360_p10 = scmp.ne.s32.totalorder %s263_s9, %s359_s10  ;;  %p365_p12 = scmp.lt.s32.totalorder %s359_s10, %s359_s10 }
  0x22   :  { %293 = vmatpush3.xpose.msk.msra.mxu0 %vm62_vm0, %v53_v1  ;;  %p366_p13 = por %p365_p12, %p364_p11 }
  0x23   :  { %294 = vmatprep.subr.msk.mxu0 %vm62_vm0, %v52_v3 }
  0x24   :  { %p367_p0 = pnand %p366_p13, %p360_p10 }
  0x26   :  { %295 = vmatpush3.xpose.msk.msra.mxu0 %vm62_vm0, %v52_v3 }
  0x27   :  { %296 = vmatprep.subr.msk.mxu0 %vm62_vm0, %v51_v4 }
  0x2a   :  { %297 = vmatpush3.xpose.msk.msra.mxu0 %vm62_vm0, %v51_v4 }
  0x2d   :  { %299 = vmatmul.mubr.msk.f32.vlgmr.msra.gmra.mxu0 %vm62_vm0, %v50_v5 }
  0xed   :  { %v300_v7 = vpop.f32.mrf.mxu0 }
  0xee   :  { %v153_v8 = vadd.f32 %v300_v7, %v275_v6 }
  0xef   :  { %v147_v9 = vpop.f32.mrf.mxu0 }
  0xf0   :  { %v159_v10 = vmul.f32 0.70710677, %v153_v8  ;;  %v148_v11 = vadd.f32 %v275_v6, %v147_v9  ;;  %v157_v59 = vmul.f32 0.5, %v153_v8 }
  0xf2   :  { %v165_v12 = vand.u32 2147483647, %v159_v10  ;;  %v158_v13 = vmul.f32 0.70710677, %v148_v11  ;;  %vm161_vm1 = vcmp.lt.f32.partialorder %v159_v10, 0.0  ;;  %v156_v56 = vmul.f32 0.5, %v148_v11 }
  0xf3   :  { %v163_v51 = vsel %vm161_vm1, -1.0, %v389_v50 }
  0xf4   :  { %v167_v14 = vmul.f32 0.3275911, %v165_v12  ;;  %v164_v15 = vand.u32 2147483647, %v158_v13  ;;  %v193_v19 = vsub.f32 0.0, %v165_v12  ;;  %vm160_vm2 = vcmp.lt.f32.partialorder %v158_v13, 0.0 }
  0xf5   :  { %v162_v54 = vsel %vm160_vm2, -1.0, %v389_v50 }
  0xf6   :  { %v169_v16 = vadd.f32 1.0, %v167_v14  ;;  %v166_v17 = vmul.f32 0.3275911, %v164_v15  ;;  %v192_v20 = vsub.f32 0.0, %v164_v15  ;;  %v195_v21 = vmul.f32 %v193_v19, %v165_v12  ;;  %v283_v19 = vld [vmem:[%s468_s4] ss:$0 sm:$0xff] }
  0xf8   :  { %307 = vrcp.f32 %v169_v16  ;;  %v168_v18 = vadd.f32 1.0, %v166_v17  ;;  %v194_v23 = vmul.f32 %v192_v20, %v164_v15  ;;  %v198_v24 = vmul.f32 1.442695, %v195_v21  ;;  %v282_v17 = vld [vmem:[%s467_s3] ss:$0 sm:$0xff] }
  0xfa   :  { %309 = vrcp.f32 %v168_v18  ;;  %v196_v28 = vmul.f32 1.442695, %v194_v23 }
  0xfb   :  { %311 = vpow2.f32 %v198_v24 }
  0xfc   :  { %313 = vpow2.f32 %v196_v28 }
 0x105   :  { %v308_v22 = vpop.eup %307 }
 0x106   :  { %v175_v25 = vmul.f32 1.0614054, %v308_v22 }
 0x107   :  { %v310_v26 = vpop.eup %309 }
 0x108   :  { %v177_v27 = vadd.f32 -1.4531521, %v175_v25  ;;  %v174_v29 = vmul.f32 1.0614054, %v310_v26  ;;  %v312_v43 = vpop.eup %311 }
 0x109   :  { %v314_v47 = vpop.eup %313 }
 0x10a   :  { %v179_v30 = vmul.f32 %v308_v22, %v177_v27  ;;  %v176_v31 = vadd.f32 -1.4531521, %v174_v29 }
 0x10c   :  { %v181_v32 = vadd.f32 1.4214138, %v179_v30  ;;  %v178_v33 = vmul.f32 %v310_v26, %v176_v31 }
 0x10e   :  { %v183_v34 = vmul.f32 %v308_v22, %v181_v32  ;;  %v180_v35 = vadd.f32 1.4214138, %v178_v33 }
 0x110   :  { %v185_v36 = vadd.f32 -0.28449672, %v183_v34  ;;  %v182_v37 = vmul.f32 %v310_v26, %v180_v35 }
 0x112   :  { %v187_v38 = vmul.f32 %v308_v22, %v185_v36  ;;  %v184_v39 = vadd.f32 -0.28449672, %v182_v37 }
 0x114   :  { %v189_v40 = vadd.f32 0.2548296, %v187_v38  ;;  %v186_v41 = vmul.f32 %v310_v26, %v184_v39 }
 0x116   :  { %v191_v42 = vmul.f32 %v308_v22, %v189_v40  ;;  %v188_v44 = vadd.f32 0.2548296, %v186_v41 }
 0x118   :  { %v201_v45 = vmul.f32 %v312_v43, %v191_v42  ;;  %v190_v46 = vmul.f32 %v310_v26, %v188_v44 }
 0x11a   :  { %v203_v48 = vsub.f32 1.0, %v201_v45  ;;  %v200_v49 = vmul.f32 %v314_v47, %v190_v46 }
 0x11c   :  { %v202_v52 = vsub.f32 1.0, %v200_v49  ;;  %v205_v53 = vmul.f32 %v203_v48, %v163_v51 }
 0x11e   :  { %v204_v55 = vmul.f32 %v202_v52, %v162_v54  ;;  %v207_v58 = vadd.f32 1.0, %v205_v53 }
 0x120   :  { %v206_v57 = vadd.f32 1.0, %v204_v55  ;;  %v209_v62 = vmul.f32 %v207_v58, %v157_v59 }
 0x122   :  { %v208_v60 = vmul.f32 %v206_v57, %v156_v56  ;;  %v213_v63 = vsel %vm62_vm0, %v209_v62, 0.0 }
 0x124   :  { %v210_v61 = vsel %vm62_vm0, %v208_v60, 0.0 }
 0x125   :  { %211 = vadd.xlane.f32.xlu0 %v210_v61 }
 0x129   :  { %214 = vadd.xlane.f32.xlu0 %v213_v63 }
 0x1ae   :  { %v212_v0 = vpop.xlane.xlu0 %211 }
 0x1af   :  { %v217_v1 = vmul.f32 0.03125, %v212_v0 }
 0x1b1   :  { %v219_v2 = vsub.f32 %v208_v60, %v217_v1 }
 0x1b2   :  { %v215_v3 = vpop.xlane.xlu0 %214 }
 0x1b3   :  { %v218_v4 = vmul.f32 0.03125, %v215_v3  ;;  %v221_v5 = vmul.f32 %v219_v2, %v219_v2 }
 0x1b5   :  { %v220_v6 = vsub.f32 %v209_v62, %v218_v4  ;;  %v223_v7 = vsel %vm62_vm0, %v221_v5, 0.0 }
 0x1b6   :  { %224 = vadd.xlane.f32.xlu1 %v223_v7 }
 0x1b7   :  { %v222_v9 = vmul.f32 %v220_v6, %v220_v6 }
 0x1b9   :  { %v226_v8 = vsel %vm62_vm0, %v222_v9, 0.0 }
 0x1ba   :  { %227 = vadd.xlane.f32.xlu1 %v226_v8 }
 0x23f   :  { %v225_v10 = vpop.xlane.xlu1 %224 }
 0x240   :  { %v229_v11 = vmul.f32 0.03125, %v225_v10 }
 0x242   :  { %v231_v12 = vadd.f32 1e-12, %v229_v11 }
 0x243   :  { %v228_v13 = vpop.xlane.xlu1 %227 }
 0x244   :  { %315 = vrsqrt.f32 %v231_v12  ;;  %v230_v14 = vmul.f32 0.03125, %v228_v13 }
 0x246   :  { %v232_v15 = vadd.f32 1e-12, %v230_v14 }
 0x248   :  { %317 = vrsqrt.f32 %v232_v15 }
 0x251   :  { %v316_v16 = vpop.eup %315 }
 0x252   :  { %v235_v18 = vmul.f32 %v316_v16, %v219_v2 }
 0x254   :  { %v244_v20 = vmul.f32 %v282_v17, %v235_v18 }
 0x255   :  { %v318_v21 = vpop.eup %317 }
 0x256   :  { %v236_v22 = vmul.f32 %v318_v21, %v220_v6  ;;  %v253_v23 = vadd.f32 %v283_v19, %v244_v20 }
 0x258   :  { %v245_v24 = vmul.f32 %v282_v17, %v236_v22  ;;  %255 = vst.msk [vmem:[#allocation7] sm:$0xff] %vm62_vm0, %v253_v23 }
 0x25a   :  { %v254_v25 = vadd.f32 %v283_v19, %v245_v24 }
 0x25c   :  { %256 = vst.msk [vmem:[#allocation7 + $0x8] sm:$0xff] %vm62_vm0, %v254_v25 }
 0x25d   :  { %370 = shalt.err (!%p367_p0)
}
 0x25e   :  { %268 = dma.vmem_to_hbm [thread:$0]  %s263_s9, 256, %s469_s5, [#allocation4], %s386_s21, %s386_s21, %s387_s22  }
 0x25f   :  { %383 = dma.done.wait [#allocation4], 256  }
 0x260   :  { %384 = vsyncadd [#allocation4], 4294967040 }
 0x261   :  { %272 = vsyncpa [#allocation3], 1 }
 0x262   :  { %273 = vsyncpa [#allocation6], 1 }
 0x263   :  { %274 = vsyncpa [#allocation4], 1 }

</bundles_post_ra>
